<compile_context>
chip_gen: v6e
topology: v6e:2x2x1
jax: 0.10.0
libtpu: 0.0.40
codegen_flags: <defaults>
</compile_context>

<pallas_src>
from functools import partial

import jax
import jax.numpy as jnp
from jax.experimental import pallas as pl
from jax.experimental.pallas import tpu as pltpu

EPS = 1e-5


def _round_up(v, m):
    return -(-v // m) * m


def _sublane_pack(dtype):
    # Sub-32-bit dtypes pack along sublanes: 8 rows (f32), 16 (bf16), 32 (i8).
    return max(8, 32 // jnp.dtype(dtype).itemsize)


def _vmem_capacity_bytes():
    # Generation-aware physical VMEM (128 MiB v5e/v6e, 64 MiB per-TC on v7x).
    try:
        cap = getattr(pltpu.get_tpu_info(), "vmem_capacity_bytes", None)
        if cap:
            return int(cap)
    except Exception:
        pass
    return 64 * 1024 * 1024  # conservative (v7x-sized) fallback


# ---------------------------------------------------------------------------
# Fast path: whole HW on the lane axis, rows tiled.
# ---------------------------------------------------------------------------
def _fused_row_kernel(x_ref, gb_ref, o_ref, *, hw, tm, eps, gb_resident):
    x = x_ref[...].astype(jnp.float32)                        # (tm, hw)

    # Two-pass variance on the already-VMEM-resident block (no extra HBM I/O,
    # no catastrophic cancellation).  torch.var default is unbiased (HW-1).
    mean = jnp.sum(x, axis=1, keepdims=True) * (1.0 / hw)     # (tm, 1)
    diff = x - mean
    var = jnp.sum(diff * diff, axis=1, keepdims=True) * (1.0 / max(hw - 1, 1))
    inv = jax.lax.rsqrt(var + eps)                            # (tm, 1)

    if gb_resident:
        # gamma/beta stay in VMEM for the whole grid; slice our row window.
        row0 = pl.multiple_of(pl.program_id(0) * tm, 8)
        gb = gb_ref[pl.ds(row0, tm), :]                       # (tm, 2) f32
    else:
        gb = gb_ref[...]                                      # (tm, 2) f32
    g = gb[:, 0:1]
    b = gb[:, 1:2]

    # out = x + (x - mean) * inv * gamma + beta
    o_ref[...] = (x + diff * (inv * g) + b).astype(o_ref.dtype)


# ---------------------------------------------------------------------------
# Fallback path for huge HW: chunk HW on a second ("arbitrary") grid axis.
# ---------------------------------------------------------------------------
def _stats_kernel(x_ref, stats_ref, s1_ref, s2_ref, *, hw, thw, eps):
    j = pl.program_id(1)

    @pl.when(j == 0)
    def _():
        s1_ref[...] = jnp.zeros_like(s1_ref)
        s2_ref[...] = jnp.zeros_like(s2_ref)

    x = x_ref[...].astype(jnp.float32)                        # (tm, thw)
    if hw % thw != 0:
        # Mask the ragged tail chunk so it does not pollute the reduction.
        col = jax.lax.broadcasted_iota(jnp.int32, x.shape, 1) + j * thw
        x = jnp.where(col < hw, x, 0.0)
    s1_ref[...] += jnp.sum(x, axis=1, keepdims=True)
    s2_ref[...] += jnp.sum(x * x, axis=1, keepdims=True)

    @pl.when(j == pl.num_programs(1) - 1)
    def _():
        s1 = s1_ref[...]
        mean = s1 * (1.0 / hw)
        var = (s2_ref[...] - s1 * mean) * (1.0 / max(hw - 1, 1))
        var = jnp.maximum(var, 0.0)                           # fp-cancel guard
        inv = jax.lax.rsqrt(var + eps)
        stats_ref[...] = jnp.concatenate([mean, inv], axis=1)


def _apply_kernel(x_ref, stats_ref, gb_ref, o_ref):
    x = x_ref[...].astype(jnp.float32)                        # (tm, thw)
    mean = stats_ref[:, 0:1]
    inv = stats_ref[:, 1:2]
    g = gb_ref[:, 0:1]
    b = gb_ref[:, 1:2]
    o_ref[...] = (x + (x - mean) * (inv * g) + b).astype(o_ref.dtype)


# ---------------------------------------------------------------------------
# Wrapper
# ---------------------------------------------------------------------------
def resnet_adain_block(x, gamma, beta, conv1_w=None, conv2_w=None, *,
                       _budget_bytes=None):
    """x: (N, C, H, W); gamma, beta: (N, C).

    conv1_w / conv2_w mirror the PyTorch module's parameters but are dead code
    in its forward pass, so they are never lowered.
    """
    # TODO(synk): conv1/conv2 + relu1 are computed-and-discarded in the PyTorch
    # forward (no observable effect); they are intentionally not lowered.
    N, C, H, W = x.shape
    hw = H * W
    rows = N * C

    x2 = x.reshape(rows, hw)
    gb = jnp.concatenate(
        [gamma.reshape(rows, 1), beta.reshape(rows, 1)], axis=1
    ).astype(jnp.float32)                                     # (rows, 2)

    itemsize = jnp.dtype(x.dtype).itemsize
    pack = _sublane_pack(x.dtype)

    # --- generation-aware VMEM sizing -------------------------------------
    cap = _vmem_capacity_bytes()
    vmem_limit = max(32 * 1024 * 1024, min(3 * cap // 4, 96 * 1024 * 1024))
    # Budget counts double-buffered in+out DMA buffers (2+2 copies at input
    # dtype) plus live f32 temps (x_f32, diff, one product ≈ 3 copies @ 4 B).
    budget = _budget_bytes if _budget_bytes is not None else 3 * vmem_limit // 4
    hw_lanes = _round_up(hw, 128)             # VMEM pads the lane axis to 128
    bytes_per_row = hw_lanes * (4 * itemsize + 3 * 4)

    if bytes_per_row * pack <= budget:
        # -------------------------------------------------------------------
        # Fast path: single streaming pass, whole HW per row tile.
        # -------------------------------------------------------------------
        tm = max(pack, (budget // bytes_per_row) // pack * pack)
        if rows > pack:
            # At least two row tiles so both v7x TensorCores get work.
            tm = max(pack, min(tm, _round_up((rows + 1) // 2, pack)))
        else:
            tm = rows                          # single full-extent block
        num_tiles = pl.cdiv(rows, tm)
        rows_padded = num_tiles * tm

        # Keep gamma/beta VMEM-resident across the whole grid when small
        # (a (rows,2) f32 tile lane-pads to 128 -> ~512 B/row).
        gb_resident = rows_padded * 512 <= 2 * 1024 * 1024
        if gb_resident:
            gb_op = jnp.pad(gb, ((0, rows_padded - rows), (0, 0)))
            gb_spec = pl.BlockSpec((rows_padded, 2), lambda i: (0, 0))
        else:
            gb_op = gb
            gb_spec = pl.BlockSpec((tm, 2), lambda i: (i, 0))

        out = pl.pallas_call(
            partial(_fused_row_kernel, hw=hw, tm=tm, eps=EPS,
                    gb_resident=gb_resident),
            out_shape=jax.ShapeDtypeStruct((rows, hw), x.dtype),
            grid_spec=pltpu.PrefetchScalarGridSpec(
                num_scalar_prefetch=0,
                grid=(num_tiles,),
                in_specs=[pl.BlockSpec((tm, hw), lambda i: (i, 0)),
                          gb_spec],
                out_specs=pl.BlockSpec((tm, hw), lambda i: (i, 0)),
            ),
            # Capacity-only win (bandwidth is unchanged); becomes a true
            # in-place update when the caller jits with donate_argnums on x.
            input_output_aliases={0: 0},
            compiler_params=pltpu.CompilerParams(
                dimension_semantics=("parallel",),
                vmem_limit_bytes=vmem_limit,
            ),
        )(x2, gb_op)
        return out.reshape(N, C, H, W)

    # -----------------------------------------------------------------------
    # Fallback: HW too large for even a minimum row tile (e.g. 512x512 f32
    # maps on v7x).  Stats pass (running sums in VMEM scratch) + apply pass.
    # -----------------------------------------------------------------------
    per_elem = 4 * itemsize + 3 * 4
    thw = max(128, min(hw_lanes, (budget // (pack * per_elem)) // 128 * 128))
    tm = max(pack, (budget // (thw * per_elem)) // pack * pack)
    if rows > pack:
        tm = max(pack, min(tm, _round_up((rows + 1) // 2, pack)))
    else:
        tm = rows
    num_row_tiles = pl.cdiv(rows, tm)
    num_hw_tiles = pl.cdiv(hw, thw)

    stats = pl.pallas_call(
        partial(_stats_kernel, hw=hw, thw=thw, eps=EPS),
        out_shape=jax.ShapeDtypeStruct((rows, 2), jnp.float32),
        grid_spec=pltpu.PrefetchScalarGridSpec(
            num_scalar_prefetch=0,
            grid=(num_row_tiles, num_hw_tiles),
            in_specs=[pl.BlockSpec((tm, thw), lambda i, j: (i, j))],
            out_specs=pl.BlockSpec((tm, 2), lambda i, j: (i, 0)),
            scratch_shapes=[pltpu.VMEM((tm, 1), jnp.float32),
                            pltpu.VMEM((tm, 1), jnp.float32)],
        ),
        compiler_params=pltpu.CompilerParams(
            dimension_semantics=("parallel", "arbitrary"),
            vmem_limit_bytes=vmem_limit,
        ),
    )(x2)

    out = pl.pallas_call(
        _apply_kernel,
        out_shape=jax.ShapeDtypeStruct((rows, hw), x.dtype),
        grid_spec=pltpu.PrefetchScalarGridSpec(
            num_scalar_prefetch=0,
            grid=(num_row_tiles, num_hw_tiles),
            in_specs=[pl.BlockSpec((tm, thw), lambda i, j: (i, j)),
                      pl.BlockSpec((tm, 2), lambda i, j: (i, 0)),
                      pl.BlockSpec((tm, 2), lambda i, j: (i, 0))],
            out_specs=pl.BlockSpec((tm, thw), lambda i, j: (i, j)),
        ),
        input_output_aliases={0: 0},
        compiler_params=pltpu.CompilerParams(
            dimension_semantics=("parallel", "parallel"),
            vmem_limit_bytes=vmem_limit,
        ),
    )(x2, stats, gb)
    return out.reshape(N, C, H, W)


# ---------------------------------------------------------------------------
# Demo / self-test
# ---------------------------------------------------------------------------
def _reference(x, gamma, beta):
    H, W = x.shape[2], x.shape[3]
    hw = H * W
    mean = jnp.mean(x, axis=(2, 3), keepdims=True)
    var = jnp.sum((x - mean) ** 2, axis=(2, 3), keepdims=True) / (hw - 1)
    return (x + (x - mean) / jnp.sqrt(var + EPS) * gamma[:, :, None, None]
            + beta[:, :, None, None])


if __name__ == "__main__":
    key = jax.random.PRNGKey(0)
    N, C, H, W = 2, 4, 16, 16
    k1, k2, k3, k4, k5, k6 = jax.random.split(key, 6)

    x = jax.random.normal(k1, (N, C, H, W), dtype=jnp.float32)
    gamma = jax.random.normal(k2, (N, C), dtype=jnp.float32)
    beta = jax.random.normal(k3, (N, C), dtype=jnp.float32)
    # Conv2d(dim, dim, 3) weights — shape-faithful to __init__, dead in forward.
    conv1_w = 0.1 * jax.random.normal(k4, (C, C, 3, 3), dtype=jnp.float32)
    conv2_w = 0.1 * jax.random.normal(k5, (C, C, 3, 3), dtype=jnp.float32)

    ref = jax.block_until_ready(_reference(x, gamma, beta))

    # 1) fast path (eager)
    out1 = jax.block_until_ready(
        resnet_adain_block(x, gamma, beta, conv1_w, conv2_w))
    assert out1.shape == (N, C, H, W) and out1.dtype == x.dtype
    assert jnp.allclose(out1, ref, atol=1e-4, rtol=1e-4)

    # 2) force the HW-chunked fallback path with a tiny artificial budget
    out2 = jax.block_until_ready(
        resnet_adain_block(x, gamma, beta, conv1_w, conv2_w,
                           _budget_bytes=4096))
    assert jnp.allclose(out2, ref, atol=1e-4, rtol=1e-4)

    # 3) a second, non-128-multiple-HW shape: fast path + forced chunked path
    x_b = jax.random.normal(k6, (N, C, 12, 12), dtype=jnp.float32)
    ref_b = jax.block_until_ready(_reference(x_b, gamma, beta))
    out_b1 = jax.block_until_ready(resnet_adain_block(x_b, gamma, beta))
    out_b2 = jax.block_until_ready(
        resnet_adain_block(x_b, gamma, beta, _budget_bytes=4096))
    assert jnp.allclose(out_b1, ref_b, atol=1e-4, rtol=1e-4)
    assert jnp.allclose(out_b2, ref_b, atol=1e-4, rtol=1e-4)

    # 4) jit with donation so the input/output alias is realized (do this
    #    last: x's buffer is consumed by the call).
    jitted = jax.jit(resnet_adain_block, donate_argnums=(0,))
    out3 = jax.block_until_ready(jitted(x, gamma, beta))
    assert jnp.allclose(out3, ref, atol=1e-4, rtol=1e-4)

    print("KERNEL_OK")
</pallas_src>

<mosaic_0001>
module attributes {stable_mosaic.version = 11 : i64} {
  func.func @_fused_row_kernel(%arg0: i32, %arg1: memref<8x256xf32, #tpu.memory_space<vmem>>, %arg2: memref<8x2xf32, #tpu.memory_space<vmem>>, %arg3: memref<8x256xf32, #tpu.memory_space<vmem>>) attributes {dimension_semantics = [#tpu.dimension_semantics<parallel>], iteration_bounds = array<i64: 1>, scalar_prefetch = 0 : i64, scratch_operands = 0 : i64, tpu.core_type = #tpu.core_type<tc>, window_params = [{transform_indices = @transform_0, window_bounds = array<i64: 8, 256>}, {pipeline_mode = #tpu.pipeline_mode<synchronous>, transform_indices = @transform_1, window_bounds = array<i64: 8, 2>}, {transform_indices = @transform_2, window_bounds = array<i64: 8, 256>}]} {
    %c0 = arith.constant 0 : index
    %c0_0 = arith.constant 0 : index
    %0 = vector.load %arg1[%c0, %c0_0] : memref<8x256xf32, #tpu.memory_space<vmem>>, vector<8x256xf32>
    %cst = arith.constant dense<0.000000e+00> : vector<8xf32>
    %1 = vector.multi_reduction <add>, %0, %cst [1] : vector<8x256xf32> to vector<8xf32>
    %2 = vector.shape_cast %1 : vector<8xf32> to vector<8x1xf32>
    %cst_1 = arith.constant 3.906250e-03 : f32
    %3 = vector.broadcast %cst_1 : f32 to vector<8x1xf32>
    %4 = arith.mulf %2, %3 : vector<8x1xf32>
    %5 = vector.broadcast %4 : vector<8x1xf32> to vector<8x256xf32>
    %6 = arith.subf %0, %5 : vector<8x256xf32>
    %7 = arith.mulf %6, %6 : vector<8x256xf32>
    %cst_2 = arith.constant dense<0.000000e+00> : vector<8xf32>
    %8 = vector.multi_reduction <add>, %7, %cst_2 [1] : vector<8x256xf32> to vector<8xf32>
    %9 = vector.shape_cast %8 : vector<8xf32> to vector<8x1xf32>
    %cst_3 = arith.constant 0.00392156886 : f32
    %10 = vector.broadcast %cst_3 : f32 to vector<8x1xf32>
    %11 = arith.mulf %9, %10 : vector<8x1xf32>
    %cst_4 = arith.constant 9.99999974E-6 : f32
    %12 = vector.broadcast %cst_4 : f32 to vector<8x1xf32>
    %13 = arith.addf %11, %12 : vector<8x1xf32>
    %14 = math.rsqrt %13 : vector<8x1xf32>
    %c8_i32 = arith.constant 8 : i32
    %15 = arith.muli %arg0, %c8_i32 : i32
    %16 = tpu.assume_multiple %15, 8 : i32
    %17 = arith.index_cast %16 : i32 to index
    %c0_5 = arith.constant 0 : index
    %18 = vector.load %arg2[%17, %c0_5] : memref<8x2xf32, #tpu.memory_space<vmem>>, vector<8x2xf32>
    %19 = vector.extract_strided_slice %18 {offsets = [0, 0], sizes = [8, 1], strides = [1, 1]} : vector<8x2xf32> to vector<8x1xf32>
    %20 = vector.extract_strided_slice %18 {offsets = [0, 1], sizes = [8, 1], strides = [1, 1]} : vector<8x2xf32> to vector<8x1xf32>
    %21 = arith.mulf %14, %19 : vector<8x1xf32>
    %22 = vector.broadcast %21 : vector<8x1xf32> to vector<8x256xf32>
    %23 = arith.mulf %6, %22 : vector<8x256xf32>
    %24 = arith.addf %0, %23 : vector<8x256xf32>
    %25 = vector.broadcast %20 : vector<8x1xf32> to vector<8x256xf32>
    %26 = arith.addf %24, %25 : vector<8x256xf32>
    %c0_6 = arith.constant 0 : index
    %c0_7 = arith.constant 0 : index
    %27 = vector.load %arg3[%c0_6, %c0_7] : memref<8x256xf32, #tpu.memory_space<vmem>>, vector<8x256xf32>
    tpu.vector_store %arg3[%c0_6, %c0_7], %26 {strides = array<i32>} : memref<8x256xf32, #tpu.memory_space<vmem>>, vector<8x256xf32>,
    return
  }
  func.func @transform_0(%arg0: i32) -> (i32, i32) {
    %c0_i32 = arith.constant 0 : i32
    %c0_i32_0 = arith.constant 0 : i32
    return %arg0, %c0_i32 : i32, i32
  }
  func.func @transform_1(%arg0: i32) -> (i32, i32) {
    %c0_i32 = arith.constant 0 : i32
    %c0_i32_0 = arith.constant 0 : i32
    %c0_i32_1 = arith.constant 0 : i32
    return %c0_i32, %c0_i32_0 : i32, i32
  }
  func.func @transform_2(%arg0: i32) -> (i32, i32) {
    %c0_i32 = arith.constant 0 : i32
    %c0_i32_0 = arith.constant 0 : i32
    return %arg0, %c0_i32 : i32, i32
  }
}

</mosaic_0001>

<bundles_post_ra>
// kernel: tpu_custom_call.1
= control target key start
LH: loop header
LB: loop body
LE: loop exit
PB: predicated region body
PF: predicated region fallthrough
CT: control target
= control target key end

     0   :  { %7 = vsyncpa [#allocation3], 0  ;;  %s158_s0 = inlined_call_operand.hbm [shape: f32[8,256], index: 0, kind: input, shape index: {}, may-alias: {0,2}]   ;;  %s159_s1 = inlined_call_operand.vmem [shape: f32[8,2], index: 1, kind: input, shape index: {}]   ;;  %s160_s2 = inlined_call_operand.hbm [shape: f32[8,256], index: 2, kind: output, shape index: {}, may-alias: {0,2}]  }
   0x1   :  { %8 = vsyncpa [#allocation4], 0  ;;  %s130_s9 = smov [#allocation2]  }
   0x2   :  { %s15_s10 = sshll.u32 %s130_s9, 4  ;;  %s16_s10 = int_to_ptr.vmem [resolvable:$true] %s15_s10 }
   0x3   :  { %s94_s11 = scalar_lea.vmem %s16_s10, 256  ;;  %p99_p1 = scmp.lt.s32.totalorder %s16_s10, %s16_s10 }
   0x4   :  { %p95_p0 = scmp.ne.s32.totalorder %s16_s10, %s94_s11  ;;  %p100_p2 = scmp.lt.s32.totalorder %s94_s11, %s94_s11 }
   0x6   :  { %p101_p3 = por %p100_p2, %p99_p1 }
   0x8   :  { %p102_p4 = pnand %p101_p3, %p95_p0 }
   0xa   :  { %105 = shalt.err (!%p102_p4)
}
   0xb   :  { %18 = dma.hbm_to_vmem [thread:$0]  %s158_s0, 256, %s16_s10, [#allocation3]  }
   0xc   :  { %126 = dma.done.wait [#allocation3], 256  }
   0xd   :  { %127 = vsyncadd [#allocation3], 4294967040  ;;  %v24_v0 = vld [vmem:[#allocation2] sm:$0xff]  ;;  %v25_v1 = vld [vmem:[#allocation2 + $0x8] sm:$0xff]  ;;  %v131_v10 = vmov 0   ;;  %v132_v11 = vmov 1  }
   0xe   :  { %v26_v2 = vadd.f32 %v25_v1, %v24_v0  ;;  %81 = vset.pattern.permute.xlu1 %v131_v10  ;;  %83 = vset.pattern.permute.xlu0 %v132_v11  ;;  %v42_v15 = vld [vmem:[%s159_s1] sm:$0xff]  ;;  %s133_s15 = smov [#allocation5]  }
   0xf   :  { %s68_s16 = sshll.u32 %s133_s15, 4  ;;  %s69_s16 = int_to_ptr.vmem [resolvable:$true] %s68_s16 }
  0x10   :  { %27 = vadd.xlane.f32.xlu0 %v26_v2  ;;  %s106_s17 = scalar_lea.vmem %s69_s16, 256  ;;  %p111_p6 = scmp.lt.s32.totalorder %s69_s16, %s69_s16 }
  0x11   :  { %p107_p5 = scmp.ne.s32.totalorder %s69_s16, %s106_s17  ;;  %p112_p7 = scmp.lt.s32.totalorder %s106_s17, %s106_s17 }
  0x13   :  { %p113_p8 = por %p112_p7, %p111_p6 }
  0x15   :  { %p114_p9 = pnand %p113_p8, %p107_p5 }
  0x99   :  { %v28_v3 = vpop.xlane.xlu0 %27 }
  0x9a   :  { %v29_v4 = vmul.f32 0.00390625, %v28_v3 }
  0x9c   :  { %v30_v5 = vsub.f32 %v24_v0, %v29_v4  ;;  %v31_v6 = vsub.f32 %v25_v1, %v29_v4 }
  0x9e   :  { %v32_v7 = vmul.f32 %v30_v5, %v30_v5  ;;  %v33_v8 = vmul.f32 %v31_v6, %v31_v6 }
  0xa0   :  { %v34_v9 = vadd.f32 %v33_v8, %v32_v7 }
  0xa2   :  { %35 = vadd.xlane.f32.xlu0 %v34_v9 }
 0x12b   :  { %v36_v12 = vpop.xlane.xlu0 %35 }
 0x12c   :  { %v37_v13 = vmul.f32 0.003921569, %v36_v12 }
 0x12e   :  { %v38_v14 = vadd.f32 1e-05, %v37_v13 }
 0x130   :  { %84 = vrsqrt.f32 %v38_v14 }
 0x13d   :  { %v85_v16 = vpop.eup %84 }
 0x13e   :  { %v43_v17 = vmul.f32 %v85_v16, %v42_v15 }
 0x140   :  { %46 = vperm.xlu1 %81, %v43_v17  }
 0x144   :  { %82 = vset.pattern.permute.xlu1 %v132_v11 }
 0x145   :  { %55 = vperm.xlu1 %82, %v42_v15  }
 0x1bb   :  { %v47_v18 = vpop.permute.xlu1 %46 }
 0x1bc   :  { %v49_v19 = vmul.f32 %v47_v18, %v30_v5  ;;  %v50_v20 = vmul.f32 %v47_v18, %v31_v6 }
 0x1be   :  { %v51_v21 = vadd.f32 %v49_v19, %v24_v0  ;;  %v52_v22 = vadd.f32 %v50_v20, %v25_v1 }
 0x1c0   :  { %v56_v23 = vpop.permute.xlu1 %55 }
 0x1c1   :  { %v58_v24 = vadd.f32 %v56_v23, %v51_v21  ;;  %v59_v25 = vadd.f32 %v56_v23, %v52_v22 }
 0x1c3   :  { %60 = vst [vmem:[#allocation5] sm:$0xff] %v58_v24  ;;  %61 = vst [vmem:[#allocation5 + $0x8] sm:$0xff] %v59_v25 }
 0x1c4   :  { %117 = shalt.err (!%p114_p9)
}
 0x1c5   :  { %71 = dma.vmem_to_hbm [thread:$0]  %s69_s16, 256, %s160_s2, [#allocation4]  }
 0x1c6   :  { %128 = dma.done.wait [#allocation4], 256  }
 0x1c7   :  { %129 = vsyncadd [#allocation4], 4294967040 }
 0x1c8   :  { %75 = vsyncpa [#allocation3], 1 }
 0x1c9   :  { %76 = vsyncpa [#allocation4], 1 }

</bundles_post_ra>
